<compile_context>
chip_gen: v7x
topology: tpu7x:2x2x1
jax: 0.10.0
libtpu: 0.0.40
codegen_flags: <defaults>
</compile_context>

<pallas_src>
import functools

import jax
import jax.numpy as jnp
from jax import lax
from jax.experimental import pallas as pl
from jax.experimental.pallas import tpu as pltpu


def _round_up(x, m):
    return ((x + m - 1) // m) * m


def _vmem_limit_bytes():
    """~3/4 of this generation's physical VMEM (48 MiB v7x, 96 MiB v5e/v6e)."""
    try:
        return int(pltpu.get_tpu_info().vmem_capacity_bytes * 3 // 4)
    except Exception:
        return None


# ----------------------------------------------------------------------------
# Pallas kernel: fused (3x3 conv as three accumulated matmuls over the
# kernel rows + folded BN/bias + ReLU6) followed by (1x1 conv as matmul +
# folded BN/bias + ReLU6).  All operands lane-dense; f32 accumulation.
# ----------------------------------------------------------------------------
def depthpoint_kernel(t0_ref, t1_ref, t2_ref, w1_ref, sh1_ref, w2_ref,
                      sh2_ref, o_ref):
    # The W-direction taps are already unrolled into the lane dim of t*_ref
    # (width 3*Cin, zero-padded to a 128 multiple); the H-direction taps are
    # the three shifted input rows t0/t1/t2 delivered by the BlockSpecs.
    acc = jnp.dot(t0_ref[...], w1_ref[0], preferred_element_type=jnp.float32)
    acc = acc + jnp.dot(t1_ref[...], w1_ref[1],
                        preferred_element_type=jnp.float32)
    acc = acc + jnp.dot(t2_ref[...], w1_ref[2],
                        preferred_element_type=jnp.float32)
    h = jnp.clip(acc + sh1_ref[...], 0.0, 6.0)          # folded bias+BN, ReLU6
    # 1x1 conv as a second MXU matmul.
    y = jnp.dot(h.astype(jnp.bfloat16), w2_ref[...],
                preferred_element_type=jnp.float32)
    o_ref[...] = jnp.clip(y + sh2_ref[...], 0.0, 6.0).astype(o_ref.dtype)


def depthpoint_forward(x_nchw, params, *, stride, out_dtype=jnp.float32):
    """Forward pass matching the PyTorch DepthPoint module (eval-mode BN).

    x_nchw: (N, Cin, H, W) float32
    returns: (N, Cout, Ho, Wo) in `out_dtype` (float32 default; bfloat16
             halves the output HBM writeback).
    """
    (w1, b1, g1, be1, m1, v1, w2, b2, g2, be2, m2, v2) = params
    eps = 1e-5

    N, Cin, H, W = x_nchw.shape
    Cout = w2.shape[-1]
    Ho = (H + 2 - 3) // stride + 1
    Wo = (W + 2 - 3) // stride + 1

    Kw = 3 * Cin                       # per-kernel-row contraction width
    Kw_pad = _round_up(Kw, 128)        # lane-dense matmul-1 contraction
    C1_pad = _round_up(Cin, 128)       # intermediate channels (lane-dense h)
    C2_pad = _round_up(Cout, 128)      # output channels (lane-dense stores)

    # ---- glue: NCHW -> NHWC (bf16), spatial pad, W-only tap expansion -------
    # Single materialization of xw; channel zero-padding folded into the same
    # concatenate (no second full-array pad pass).  H taps are fused in-kernel.
    x = jnp.transpose(x_nchw, (0, 2, 3, 1)).astype(jnp.bfloat16)   # (N,H,W,Cin)
    xp = jnp.pad(x, ((0, 0), (1, 1), (1, 1), (0, 0)))              # (N,H+2,W+2,Cin)
    cols = [xp[:, :, kw:kw + stride * Wo:stride, :] for kw in range(3)]
    if Kw_pad > Kw:
        cols.append(jnp.zeros((N, H + 2, Wo, Kw_pad - Kw), jnp.bfloat16))
    xw = jnp.concatenate(cols, axis=-1)                  # (N, H+2, Wo, Kw_pad)

    # ---- glue: fold BN + conv bias into weights / shifts, pad, cast ---------
    s1 = g1 / jnp.sqrt(v1 + eps)
    s2 = g2 / jnp.sqrt(v2 + eps)
    w1_f = (w1 * s1).reshape(3, Kw, Cin)         # rows ordered (kh | kw, cin)
    w2_f = w2.reshape(Cin, Cout) * s2[None, :]
    sh1 = (b1 - m1) * s1 + be1
    sh2 = (b2 - m2) * s2 + be2

    w1_p = jnp.zeros((3, Kw_pad, C1_pad), jnp.float32).at[:, :Kw, :Cin].set(
        w1_f).astype(jnp.bfloat16)
    w2_p = jnp.zeros((C1_pad, C2_pad), jnp.float32).at[:Cin, :Cout].set(
        w2_f).astype(jnp.bfloat16)
    sh1_p = jnp.zeros((1, C1_pad), jnp.float32).at[0, :Cin].set(sh1)
    sh2_p = jnp.zeros((1, C2_pad), jnp.float32).at[0, :Cout].set(sh2)

    # ---- BlockSpecs ----------------------------------------------------------
    def tap_spec(kh):
        # Fused im2col (H direction): input row for tap kh of output row ho.
        return pl.BlockSpec(
            (None, None, Wo, Kw_pad),
            lambda n, ho, _kh=kh: (n, ho * stride + _kh, 0, 0))

    def const_spec(shape):
        index_map = lambda n, ho: (0,) * len(shape)
        try:
            # Constant blocks never change -> single-buffer to halve their
            # resident VMEM (matters most on v7x's 64 MiB VMEM).
            return pl.BlockSpec(shape, index_map, pipeline_mode=pl.Buffered(1))
        except Exception:  # older JAX without pipeline_mode / pl.Buffered
            return pl.BlockSpec(shape, index_map)

    grid = (N, Ho)
    cp_kwargs = dict(dimension_semantics=("parallel", "parallel"))
    vmem_limit = _vmem_limit_bytes()
    if vmem_limit is not None:
        cp_kwargs["vmem_limit_bytes"] = vmem_limit

    out = pl.pallas_call(
        depthpoint_kernel,
        out_shape=jax.ShapeDtypeStruct((N, Ho, Wo, C2_pad), out_dtype),
        grid=grid,
        in_specs=[
            tap_spec(0), tap_spec(1), tap_spec(2),   # fused im2col (kh taps)
            const_spec((3, Kw_pad, C1_pad)),         # W1 (BN folded), per kh
            const_spec((1, C1_pad)),                 # shift1
            const_spec((C1_pad, C2_pad)),            # W2 (BN folded)
            const_spec((1, C2_pad)),                 # shift2
        ],
        out_specs=pl.BlockSpec((None, None, Wo, C2_pad),
                               lambda n, ho: (n, ho, 0, 0)),
        compiler_params=pltpu.CompilerParams(**cp_kwargs),
    )(xw, xw, xw, w1_p, sh1_p, w2_p, sh2_p)

    # ---- glue: strip channel padding, back to NCHW ---------------------------
    out = out[..., :Cout]                          # (N, Ho, Wo, Cout)
    return jnp.transpose(out, (0, 3, 1, 2))        # (N, Cout, Ho, Wo)


# ----------------------------------------------------------------------------
# Pure-JAX f32 reference (lax.conv) for correctness verification.
# ----------------------------------------------------------------------------
def reference_forward(x_nchw, params, *, stride):
    (w1, b1, g1, be1, m1, v1, w2, b2, g2, be2, m2, v2) = params
    eps = 1e-5
    x = jnp.transpose(x_nchw, (0, 2, 3, 1))
    dn = ("NHWC", "HWIO", "NHWC")
    h = lax.conv_general_dilated(x, w1, (stride, stride), ((1, 1), (1, 1)),
                                 dimension_numbers=dn) + b1
    h = (h - m1) / jnp.sqrt(v1 + eps) * g1 + be1
    h = jnp.clip(h, 0.0, 6.0)
    y = lax.conv_general_dilated(h, w2, (1, 1), ((0, 0), (0, 0)),
                                 dimension_numbers=dn) + b2
    y = (y - m2) / jnp.sqrt(v2 + eps) * g2 + be2
    y = jnp.clip(y, 0.0, 6.0)
    return jnp.transpose(y, (0, 3, 1, 2))


def init_params(key, in_channels, out_channels):
    ks = jax.random.split(key, 8)
    w1 = 0.2 * jax.random.normal(ks[0], (3, 3, in_channels, in_channels),
                                 jnp.float32)           # HWIO
    b1 = 0.1 * jax.random.normal(ks[1], (in_channels,), jnp.float32)
    g1 = 1.0 + 0.1 * jax.random.normal(ks[2], (in_channels,), jnp.float32)
    be1 = 0.1 * jax.random.normal(ks[3], (in_channels,), jnp.float32)
    m1 = 0.05 * jax.random.normal(ks[4], (in_channels,), jnp.float32)
    v1 = jnp.abs(1.0 + 0.1 * jax.random.normal(ks[5], (in_channels,),
                                               jnp.float32))
    w2 = 0.2 * jax.random.normal(ks[6], (1, 1, in_channels, out_channels),
                                 jnp.float32)
    b2 = 0.1 * jax.random.normal(ks[7], (out_channels,), jnp.float32)
    g2 = jnp.full((out_channels,), 1.05, jnp.float32)
    be2 = jnp.full((out_channels,), 0.02, jnp.float32)
    m2 = jnp.full((out_channels,), 0.01, jnp.float32)
    v2 = jnp.full((out_channels,), 0.9, jnp.float32)
    return (w1, b1, g1, be1, m1, v1, w2, b2, g2, be2, m2, v2)


if __name__ == "__main__":
    key = jax.random.PRNGKey(0)
    k_x, k_p = jax.random.split(key)

    N, Cin, H, W = 2, 8, 16, 16
    Cout = 16
    stride = 2

    x = jax.random.normal(k_x, (N, Cin, H, W), jnp.float32)
    params = init_params(k_p, Cin, Cout)

    fwd = jax.jit(functools.partial(depthpoint_forward, stride=stride))
    out = jax.block_until_ready(fwd(x, params))

    ref = jax.block_until_ready(reference_forward(x, params, stride=stride))
    assert out.shape == (N, Cout, H // stride, W // stride), out.shape
    # bf16 MXU inputs (f32 accumulation) vs. f32 reference -> relaxed tolerance.
    assert jnp.allclose(out, ref, atol=5e-2, rtol=5e-2), float(
        jnp.max(jnp.abs(out - ref)))

    # bf16-output fast path (halves output writeback); only extra error is the
    # final bf16 rounding of values in [0, 6].
    fwd_bf16 = jax.jit(functools.partial(depthpoint_forward, stride=stride,
                                         out_dtype=jnp.bfloat16))
    out_bf16 = jax.block_until_ready(fwd_bf16(x, params))
    assert out_bf16.dtype == jnp.bfloat16
    assert jnp.allclose(out_bf16.astype(jnp.float32), out, atol=5e-2), float(
        jnp.max(jnp.abs(out_bf16.astype(jnp.float32) - out)))

    print("KERNEL_OK")
</pallas_src>

<mosaic_0001>
module attributes {stable_mosaic.version = 11 : i64} {
  func.func @depthpoint_kernel(%arg0: i32, %arg1: i32, %arg2: memref<1x1x8x128xbf16, #tpu.memory_space<vmem>>, %arg3: memref<1x1x8x128xbf16, #tpu.memory_space<vmem>>, %arg4: memref<1x1x8x128xbf16, #tpu.memory_space<vmem>>, %arg5: memref<3x128x128xbf16, #tpu.memory_space<vmem>>, %arg6: memref<1x128xf32, #tpu.memory_space<vmem>>, %arg7: memref<128x128xbf16, #tpu.memory_space<vmem>>, %arg8: memref<1x128xf32, #tpu.memory_space<vmem>>, %arg9: memref<1x1x8x128xf32, #tpu.memory_space<vmem>>) attributes {dimension_semantics = [#tpu.dimension_semantics<parallel>, #tpu.dimension_semantics<parallel>], iteration_bounds = array<i64: 2, 8>, scalar_prefetch = 0 : i64, scratch_operands = 0 : i64, tpu.core_type = #tpu.core_type<tc>, window_params = [{transform_indices = @transform_0, window_bounds = array<i64: 1, 1, 8, 128>}, {transform_indices = @transform_1, window_bounds = array<i64: 1, 1, 8, 128>}, {transform_indices = @transform_2, window_bounds = array<i64: 1, 1, 8, 128>}, {pipeline_mode = #tpu.pipeline_mode<synchronous>, transform_indices = @transform_3, window_bounds = array<i64: 3, 128, 128>}, {pipeline_mode = #tpu.pipeline_mode<synchronous>, transform_indices = @transform_4, window_bounds = array<i64: 1, 128>}, {pipeline_mode = #tpu.pipeline_mode<synchronous>, transform_indices = @transform_5, window_bounds = array<i64: 128, 128>}, {pipeline_mode = #tpu.pipeline_mode<synchronous>, transform_indices = @transform_6, window_bounds = array<i64: 1, 128>}, {transform_indices = @transform_7, window_bounds = array<i64: 1, 1, 8, 128>}]} {
    %c0 = arith.constant 0 : index
    %c0_0 = arith.constant 0 : index
    %c0_1 = arith.constant 0 : index
    %c0_2 = arith.constant 0 : index
    %0 = vector.load %arg2[%c0, %c0_0, %c0_1, %c0_2] : memref<1x1x8x128xbf16, #tpu.memory_space<vmem>>, vector<1x1x8x128xbf16>
    %1 = vector.shape_cast %0 : vector<1x1x8x128xbf16> to vector<8x128xbf16>
    %c0_3 = arith.constant 0 : index
    %c0_4 = arith.constant 0 : index
    %c0_5 = arith.constant 0 : index
    %2 = vector.load %arg5[%c0_3, %c0_4, %c0_5] : memref<3x128x128xbf16, #tpu.memory_space<vmem>>, vector<1x128x128xbf16>
    %3 = vector.shape_cast %2 : vector<1x128x128xbf16> to vector<128x128xbf16>
    %cst = arith.constant dense<0.000000e+00> : vector<8x128xf32>
    %4 = tpu.matmul %1, %3, %cst {dimension_numbers = #tpu.dot_dimension_numbers<[1], [0], [0], [1], [0, 0, 1, 1], [], []>} : vector<8x128xbf16>, vector<128x128xbf16>, vector<8x128xf32> -> vector<8x128xf32>
    %c0_6 = arith.constant 0 : index
    %c0_7 = arith.constant 0 : index
    %c0_8 = arith.constant 0 : index
    %c0_9 = arith.constant 0 : index
    %5 = vector.load %arg3[%c0_6, %c0_7, %c0_8, %c0_9] : memref<1x1x8x128xbf16, #tpu.memory_space<vmem>>, vector<1x1x8x128xbf16>
    %6 = vector.shape_cast %5 : vector<1x1x8x128xbf16> to vector<8x128xbf16>
    %c1 = arith.constant 1 : index
    %c0_10 = arith.constant 0 : index
    %c0_11 = arith.constant 0 : index
    %7 = vector.load %arg5[%c1, %c0_10, %c0_11] : memref<3x128x128xbf16, #tpu.memory_space<vmem>>, vector<1x128x128xbf16>
    %8 = vector.shape_cast %7 : vector<1x128x128xbf16> to vector<128x128xbf16>
    %cst_12 = arith.constant dense<0.000000e+00> : vector<8x128xf32>
    %9 = tpu.matmul %6, %8, %cst_12 {dimension_numbers = #tpu.dot_dimension_numbers<[1], [0], [0], [1], [0, 0, 1, 1], [], []>} : vector<8x128xbf16>, vector<128x128xbf16>, vector<8x128xf32> -> vector<8x128xf32>
    %10 = arith.addf %4, %9 : vector<8x128xf32>
    %c0_13 = arith.constant 0 : index
    %c0_14 = arith.constant 0 : index
    %c0_15 = arith.constant 0 : index
    %c0_16 = arith.constant 0 : index
    %11 = vector.load %arg4[%c0_13, %c0_14, %c0_15, %c0_16] : memref<1x1x8x128xbf16, #tpu.memory_space<vmem>>, vector<1x1x8x128xbf16>
    %12 = vector.shape_cast %11 : vector<1x1x8x128xbf16> to vector<8x128xbf16>
    %c2 = arith.constant 2 : index
    %c0_17 = arith.constant 0 : index
    %c0_18 = arith.constant 0 : index
    %13 = vector.load %arg5[%c2, %c0_17, %c0_18] : memref<3x128x128xbf16, #tpu.memory_space<vmem>>, vector<1x128x128xbf16>
    %14 = vector.shape_cast %13 : vector<1x128x128xbf16> to vector<128x128xbf16>
    %cst_19 = arith.constant dense<0.000000e+00> : vector<8x128xf32>
    %15 = tpu.matmul %12, %14, %cst_19 {dimension_numbers = #tpu.dot_dimension_numbers<[1], [0], [0], [1], [0, 0, 1, 1], [], []>} : vector<8x128xbf16>, vector<128x128xbf16>, vector<8x128xf32> -> vector<8x128xf32>
    %16 = arith.addf %10, %15 : vector<8x128xf32>
    %c0_20 = arith.constant 0 : index
    %c0_21 = arith.constant 0 : index
    %17 = vector.load %arg6[%c0_20, %c0_21] : memref<1x128xf32, #tpu.memory_space<vmem>>, vector<1x128xf32>
    %18 = vector.broadcast %17 : vector<1x128xf32> to vector<8x128xf32>
    %19 = arith.addf %16, %18 : vector<8x128xf32>
    %cst_22 = arith.constant 0.000000e+00 : f32
    %cst_23 = arith.constant 6.000000e+00 : f32
    %20 = vector.broadcast %cst_22 : f32 to vector<8x128xf32>
    %21 = arith.maximumf %20, %19 : vector<8x128xf32>
    %22 = vector.broadcast %cst_23 : f32 to vector<8x128xf32>
    %23 = arith.minimumf %22, %21 : vector<8x128xf32>
    %24 = arith.truncf %23 : vector<8x128xf32> to vector<8x128xbf16>
    %c0_24 = arith.constant 0 : index
    %c0_25 = arith.constant 0 : index
    %25 = vector.load %arg7[%c0_24, %c0_25] : memref<128x128xbf16, #tpu.memory_space<vmem>>, vector<128x128xbf16>
    %cst_26 = arith.constant dense<0.000000e+00> : vector<8x128xf32>
    %26 = tpu.matmul %24, %25, %cst_26 {dimension_numbers = #tpu.dot_dimension_numbers<[1], [0], [0], [1], [0, 0, 1, 1], [], []>} : vector<8x128xbf16>, vector<128x128xbf16>, vector<8x128xf32> -> vector<8x128xf32>
    %c0_27 = arith.constant 0 : index
    %c0_28 = arith.constant 0 : index
    %27 = vector.load %arg8[%c0_27, %c0_28] : memref<1x128xf32, #tpu.memory_space<vmem>>, vector<1x128xf32>
    %28 = vector.broadcast %27 : vector<1x128xf32> to vector<8x128xf32>
    %29 = arith.addf %26, %28 : vector<8x128xf32>
    %cst_29 = arith.constant 0.000000e+00 : f32
    %cst_30 = arith.constant 6.000000e+00 : f32
    %30 = vector.broadcast %cst_29 : f32 to vector<8x128xf32>
    %31 = arith.maximumf %30, %29 : vector<8x128xf32>
    %32 = vector.broadcast %cst_30 : f32 to vector<8x128xf32>
    %33 = arith.minimumf %32, %31 : vector<8x128xf32>
    %c0_31 = arith.constant 0 : index
    %c0_32 = arith.constant 0 : index
    %c0_33 = arith.constant 0 : index
    %c0_34 = arith.constant 0 : index
    %34 = vector.load %arg9[%c0_31, %c0_32, %c0_33, %c0_34] : memref<1x1x8x128xf32, #tpu.memory_space<vmem>>, vector<1x1x8x128xf32>
    %35 = vector.shape_cast %34 : vector<1x1x8x128xf32> to vector<8x128xf32>
    %36 = vector.shape_cast %33 : vector<8x128xf32> to vector<1x1x8x128xf32>
    tpu.vector_store %arg9[%c0_31, %c0_32, %c0_33, %c0_34], %36 {strides = array<i32>} : memref<1x1x8x128xf32, #tpu.memory_space<vmem>>, vector<1x1x8x128xf32>,
    return
  }
  func.func @transform_0(%arg0: i32, %arg1: i32) -> (i32, i32, i32, i32) {
    %c2_i32 = arith.constant 2 : i32
    %0 = arith.muli %arg1, %c2_i32 : i32
    %c0_i32 = arith.constant 0 : i32
    %1 = arith.addi %0, %c0_i32 : i32
    %c0_i32_0 = arith.constant 0 : i32
    %c0_i32_1 = arith.constant 0 : i32
    %c0_i32_2 = arith.constant 0 : i32
    return %arg0, %1, %c0_i32_0, %c0_i32_1 : i32, i32, i32, i32
  }
  func.func @transform_1(%arg0: i32, %arg1: i32) -> (i32, i32, i32, i32) {
    %c2_i32 = arith.constant 2 : i32
    %0 = arith.muli %arg1, %c2_i32 : i32
    %c1_i32 = arith.constant 1 : i32
    %1 = arith.addi %0, %c1_i32 : i32
    %c0_i32 = arith.constant 0 : i32
    %c0_i32_0 = arith.constant 0 : i32
    %c0_i32_1 = arith.constant 0 : i32
    return %arg0, %1, %c0_i32, %c0_i32_0 : i32, i32, i32, i32
  }
  func.func @transform_2(%arg0: i32, %arg1: i32) -> (i32, i32, i32, i32) {
    %c2_i32 = arith.constant 2 : i32
    %0 = arith.muli %arg1, %c2_i32 : i32
    %c2_i32_0 = arith.constant 2 : i32
    %1 = arith.addi %0, %c2_i32_0 : i32
    %c0_i32 = arith.constant 0 : i32
    %c0_i32_1 = arith.constant 0 : i32
    %c0_i32_2 = arith.constant 0 : i32
    return %arg0, %1, %c0_i32, %c0_i32_1 : i32, i32, i32, i32
  }
  func.func @transform_3(%arg0: i32, %arg1: i32) -> (i32, i32, i32) {
    %c0_i32 = arith.constant 0 : i32
    %c0_i32_0 = arith.constant 0 : i32
    %c0_i32_1 = arith.constant 0 : i32
    %c0_i32_2 = arith.constant 0 : i32
    return %c0_i32, %c0_i32_0, %c0_i32_1 : i32, i32, i32
  }
  func.func @transform_4(%arg0: i32, %arg1: i32) -> (i32, i32) {
    %c0_i32 = arith.constant 0 : i32
    %c0_i32_0 = arith.constant 0 : i32
    %c0_i32_1 = arith.constant 0 : i32
    return %c0_i32, %c0_i32_0 : i32, i32
  }
  func.func @transform_5(%arg0: i32, %arg1: i32) -> (i32, i32) {
    %c0_i32 = arith.constant 0 : i32
    %c0_i32_0 = arith.constant 0 : i32
    %c0_i32_1 = arith.constant 0 : i32
    return %c0_i32, %c0_i32_0 : i32, i32
  }
  func.func @transform_6(%arg0: i32, %arg1: i32) -> (i32, i32) {
    %c0_i32 = arith.constant 0 : i32
    %c0_i32_0 = arith.constant 0 : i32
    %c0_i32_1 = arith.constant 0 : i32
    return %c0_i32, %c0_i32_0 : i32, i32
  }
  func.func @transform_7(%arg0: i32, %arg1: i32) -> (i32, i32, i32, i32) {
    %c0_i32 = arith.constant 0 : i32
    %c0_i32_0 = arith.constant 0 : i32
    %c0_i32_1 = arith.constant 0 : i32
    return %arg0, %arg1, %c0_i32, %c0_i32_0 : i32, i32, i32, i32
  }
}

</mosaic_0001>

<bundles_post_ra>
// kernel: depthpoint_forward.1
= control target key start
LH: loop header
LB: loop body
LE: loop exit
PB: predicated region body
PF: predicated region fallthrough
CT: control target
= control target key end

     0   :  { %s1333_s24 = smov 0   ;;  %s1335_s25 = smov 0   ;;  %s1556_s0 = inlined_call_operand.vmem [shape: bf16[2,18,8,128], index: 0, kind: input, shape index: {}, may-alias: {0,1,2}]   ;;  %s1557_s1 = inlined_call_operand.vmem [shape: bf16[2,18,8,128], index: 1, kind: input, shape index: {}, may-alias: {0,1,2}]   ;;  %s1558_s2 = inlined_call_operand.vmem [shape: bf16[2,18,8,128], index: 2, kind: input, shape index: {}, may-alias: {0,1,2}]   ;;  %s1559_s3 = inlined_call_operand.vmem [shape: bf16[3,128,128], index: 3, kind: input, shape index: {}]   ;;  %s1560_s4 = inlined_call_operand.vmem [shape: f32[1,128], index: 4, kind: input, shape index: {}]   ;;  %s1561_s5 = inlined_call_operand.vmem [shape: bf16[128,128], index: 5, kind: input, shape index: {}]   ;;  %s1562_s6 = inlined_call_operand.vmem [shape: f32[1,128], index: 6, kind: input, shape index: {}]   ;;  %s1563_s7 = inlined_call_operand.vmem [shape: f32[2,8,8,128], index: 7, kind: output, shape index: {}]  }
   0x1   :  { %s1337_s26 = smov 0   ;;  %s1339_s27 = smov 0  }
   0x2   :  { %s1341_s28 = smov 0  }
   0x3 LB: > { %s26_s29 = sadd.s32 1, %s1281_s26  ;;  %s29_s30 = sadd.s32 1, %s1285_s27  ;;  %s1289_s28 = sphi %s1341_s28, %s17_s28   ;;  %s1285_s27 = sphi %s1339_s27, %s1567_s27   ;;  %s1281_s26 = sphi %s1337_s26, %s1566_s26   ;;  %s1277_s25 = sphi %s1335_s25, %s1565_s25   ;;  %s1273_s24 = sphi %s1333_s24, %s1564_s24  }
   0x4   : > { %p27_p0 = scmp.ge.s32.totalorder %s26_s29, 8  ;;  %p983_p1 = scmp.ge.s32.totalorder %s1289_s28, 1 }
   0x5   : > { %p306_p2 = scmp.lt.s32.totalorder %s1289_s28, 17 }
   0x6   : > { %s1569_s29 = smov (%p27_p0, %s26_s29), 0  ;;  %s1571_s30 = smov (!%p27_p0, %s29_s30), %s1285_s27 }
   0x7   : > { %p307_p3 = pnand %p983_p1, %p306_p2  ;;  %p31_p4 = scmp.ge.s32.totalorder %s1571_s30, 2 }
   0x8   : > { %v1219_v0 = vld [vmem:[%s1559_s3 + $0x40] sm:$0xff] (!%p307_p3)   ;;  %v1291_v1 = vmov (!%p307_p3), 0.0   ;;  %v1221_v3 = vld [vmem:[%s1559_s3 + $0x48] sm:$0xff] (!%p307_p3)   ;;  %vm1292_vm0 = vmmov (!%p307_p3), 0   ;;  %s1388_s16 = sshll.u32 (!%p307_p3), %s1273_s24, 1  ;;  %v1223_v5 = vld [vmem:[%s1559_s3 + $0x50] sm:$0xff] (!%p307_p3)  }
   0x9   : > { %s1573_s30 = smov (%p31_p4, %s1571_s30), 0  ;;  %310 = sbr.rel (%p307_p3) target bundleno = 515 (0x203), region = 48 }
   0xa   : > { %1096 = vmatprep.subr.bf16.mxu0 (!%p307_p3), %v1291_v1  ;;  %1116 = vmatprep.subr.bf16.mxu1 (!%p307_p3), %v1291_v1  ;;  %v1220_v2 = vld [vmem:[%s1559_s3] sm:$0xff] (!%p307_p3)   ;;  %v1222_v4 = vld [vmem:[%s1559_s3 + $0x8] sm:$0xff] (!%p307_p3)   ;;  %p366_p5 = scmp.lt.s32.totalorder (!%p307_p3), %s1277_s25, 1  ;;  %v1224_v6 = vld [vmem:[%s1559_s3 + $0x10] sm:$0xff] (!%p307_p3)   ;;  %s376_s21 = sadd.s32 (!%p307_p3), 1, %s1388_s16 }
   0xb   : > { %1097 = vmatpush3.bf16.msra.mxu0 (!%p307_p3), %v1219_v0  ;;  %1112 = vmatprep.mubr.msk.bf16.mxu0 (!%p307_p3), %vm1292_vm0, %v1291_v1  ;;  %v1225_v7 = vld [vmem:[%s1559_s3 + $0x58] sm:$0xff] (!%p307_p3)   ;;  %p379_p6 = scmp.lt.s32.totalorder (!%p307_p3), %s376_s21, 17  ;;  %p368_p7 = scmp.lt.s32.totalorder (!%p307_p3), %s1388_s16, 17  ;;  %v1227_v9 = vld [vmem:[%s1559_s3 + $0x60] sm:$0xff] (!%p307_p3)   ;;  %v1229_v11 = vld [vmem:[%s1559_s3 + $0x68] sm:$0xff] (!%p307_p3)  }
   0xc   : > { %1117 = vmatpush3.bf16.msra.mxu1 (!%p307_p3), %v1220_v2  ;;  %1098 = vmatprep.subr.bf16.mxu0 (!%p307_p3), %v1291_v1  ;;  %v1226_v8 = vld [vmem:[%s1559_s3 + $0x18] sm:$0xff] (!%p307_p3)   ;;  %v1228_v10 = vld [vmem:[%s1559_s3 + $0x20] sm:$0xff] (!%p307_p3)   ;;  %v1230_v12 = vld [vmem:[%s1559_s3 + $0x28] sm:$0xff] (!%p307_p3)   ;;  %s388_s19 = sadd.s32 (!%p307_p3), 2, %s1388_s16  ;;  %p401_p9 = scmp.lt.s32.totalorder (!%p307_p3), %s1273_s24, 7 }
   0xd   : > { %1118 = vmatprep.subr.bf16.mxu1 (!%p307_p3), %v1291_v1  ;;  %1132 = vmatprep.mubr.msk.bf16.mxu1 (!%p307_p3), %vm1292_vm0, %v1291_v1  ;;  %v1231_v13 = vld [vmem:[%s1559_s3 + $0x70] sm:$0xff] (!%p307_p3)   ;;  %v1233_v15 = vld [vmem:[%s1559_s3 + $0x78] sm:$0xff] (!%p307_p3)   ;;  %v1235_v18 = vld [vmem:[%s1559_s3 + $0x80] sm:$0xff] (!%p307_p3)   ;;  %p391_p8 = scmp.lt.s32.totalorder (!%p307_p3), %s388_s19, 17 }
   0xe   : > { %v1232_v14 = vld [vmem:[%s1559_s3 + $0x30] sm:$0xff] (!%p307_p3)   ;;  %v1234_v16 = vld [vmem:[%s1559_s3 + $0x38] sm:$0xff] (!%p307_p3)   ;;  %v1236_v20 = vld [vmem:[%s1559_s3 + $0x88] sm:$0xff] (!%p307_p3)  }
   0xf   : > { %1099 = vmatpush3.bf16.msra.mxu0 (!%p307_p3), %v1221_v3  ;;  %v1237_v21 = vld [vmem:[%s1559_s3 + $0x90] sm:$0xff] (!%p307_p3)   ;;  %v1238_v22 = vld [vmem:[%s1559_s3 + $0x98] sm:$0xff] (!%p307_p3)   ;;  %v1239_v23 = vld [vmem:[%s1559_s3 + $0xa0] sm:$0xff] (!%p307_p3)  }
  0x10   : > { %1119 = vmatpush3.bf16.msra.mxu1 %v1222_v4  ;;  %1100 = vmatprep.subr.bf16.mxu0 %v1291_v1  ;;  %s1575_s25 = smov (!%p366_p5, %s1277_s25), 1  ;;  %s1577_s21 = smov (!%p379_p6, %s376_s21), 17  ;;  %v1240_v24 = vld [vmem:[%s1559_s3 + $0xa8] sm:$0xff]   ;;  %v1241_v25 = vld [vmem:[%s1559_s3 + $0xb0] sm:$0xff]   ;;  %v1242_v26 = vld [vmem:[%s1559_s3 + $0xb8] sm:$0xff]  }
  0x11   : > { %1120 = vmatprep.subr.bf16.mxu1 %v1291_v1  ;;  %s1416_s12 = smul.u32 18, %s1575_s25  ;;  %s1579_s19 = smov (!%p391_p8, %s388_s19), 17  ;;  %v1243_v28 = vld [vmem:[%s1561_s5] sm:$0xff]   ;;  %v1244_v29 = vld [vmem:[%s1561_s5 + $0x8] sm:$0xff]   ;;  %v1245_v30 = vld [vmem:[%s1561_s5 + $0x10] sm:$0xff]  }
  0x12   : > { %s369_s15 = scalar_select %p368_p7, %s1388_s16, 17  ;;  %v1246_v31 = vld [vmem:[%s1561_s5 + $0x18] sm:$0xff]   ;;  %v1247_v32 = vld [vmem:[%s1561_s5 + $0x20] sm:$0xff]   ;;  %v1248_v33 = vld [vmem:[%s1561_s5 + $0x28] sm:$0xff]  }
  0x13   : > { %1101 = vmatpush3.bf16.msra.mxu0 %v1223_v5  ;;  %s382_s22 = sadd.s32 %s1416_s12, %s1577_s21  ;;  %v1249_v34 = vld [vmem:[%s1561_s5 + $0x30] sm:$0xff]   ;;  %v1250_v35 = vld [vmem:[%s1561_s5 + $0x38] sm:$0xff]   ;;  %v1048_v46 = vld [vmem:[%s1560_s4] ss:$0 sm:$0xff]  ;;  %s1581_s24 = smov (!%p401_p9, %s1273_s24), 7 }
  0x14   : > { %1121 = vmatpush3.bf16.msra.mxu1 %v1224_v6  ;;  %1102 = vmatprep.subr.bf16.mxu0 %v1291_v1  ;;  %s371_s23 = sadd.s32 %s1416_s12, %s369_s15  ;;  %s987_s21 = sshll.u32 %s382_s22, 2  ;;  %v1049_v55 = vld [vmem:[%s1562_s6] ss:$0 sm:$0xff] }
  0x15   : > { %1122 = vmatprep.subr.bf16.mxu1 %v1291_v1  ;;  %s985_s15 = sshll.u32 %s371_s23, 2  ;;  %s384_s8 = scalar_lea.vmem %s1557_s1, %s987_s21 }
  0x16   : > { %s373_s11 = scalar_lea.vmem %s1556_s0, %s985_s15  ;;  %v425_v17 = vld [vmem:[%s384_s8] sm:$0xf] }
  0x17   : > { %1103 = vmatpush3.bf16.msra.mxu0 %v1225_v7  ;;  %v408_v19 = vld [vmem:[%s373_s11] sm:$0xf]  ;;  %s394_s11 = sadd.s32 %s1416_s12, %s1579_s19  ;;  %s990_s19 = sshll.u32 %s1575_s25, 3 }
  0x18   : > { %1123 = vmatpush3.bf16.msra.mxu1 %v1226_v8  ;;  %1104 = vmatprep.subr.bf16.mxu0 %v1291_v1  ;;  %s989_s23 = sshll.u32 %s394_s11, 2  ;;  %s404_s20 = sadd.s32 %s990_s19, %s1581_s24 }
  0x19   : > { %1124 = vmatprep.subr.bf16.mxu1 %v1291_v1  ;;  %s396_s17 = scalar_lea.vmem %s1558_s2, %s989_s23  ;;  %s991_s10 = sshll.u32 %s404_s20, 3 }
  0x1a   : > { %v619_v27 = vld [vmem:[%s396_s17] sm:$0xf]  ;;  %s406_s22 = scalar_lea.vmem %s1563_s7, %s991_s10 }
  0x1b   : > { %1105 = vmatpush3.bf16.msra.mxu0 %v1227_v9 }
  0x1c   : > { %1125 = vmatpush3.bf16.msra.mxu1 %v1228_v10  ;;  %1106 = vmatprep.subr.bf16.mxu0 %v1291_v1 }
  0x1d   : > { %1126 = vmatprep.subr.bf16.mxu1 %v1291_v1 }
  0x1f   : > { %1107 = vmatpush3.bf16.msra.mxu0 %v1229_v11 }
  0x20   : > { %1127 = vmatpush3.bf16.msra.mxu1 %v1230_v12  ;;  %1108 = vmatprep.subr.bf16.mxu0 %v1291_v1 }
  0x21   : > { %1128 = vmatprep.subr.bf16.mxu1 %v1291_v1 }
  0x23   : > { %1109 = vmatpush3.bf16.msra.mxu0 %v1231_v13 }
  0x24   : > { %1129 = vmatpush3.bf16.msra.mxu1 %v1232_v14  ;;  %1110 = vmatprep.subr.bf16.mxu0 %v1291_v1 }
  0x25   : > { %1130 = vmatprep.subr.bf16.mxu1 %v1291_v1 }
  0x27   : > { %1111 = vmatpush3.bf16.msra.mxu0 %v1233_v15 }
  0x28   : > { %1131 = vmatpush3.bf16.msra.mxu1 %v1234_v16  ;;  %1136 = vmatprep.subr.bf16.mxu0 %v1291_v1 }
  0x29   : > { %1156 = vmatprep.subr.bf16.mxu1 %v1291_v1 }
  0x2a   : > { %1113 = vmatmul.mubr.bf16.vlgmr.msra.gmra.mrb[0].mxu0 %v425_v17 }
  0x2b   : > { %1133 = vmatmul.mubr.bf16.vlgmr.msra.gmra.mrb[0].mxu1 %v408_v19  ;;  %1137 = vmatpush3.bf16.msra.mxu0 %v1235_v18 }
  0x2c   : > { %1138 = vmatprep.subr.bf16.mxu0 %v1291_v1  ;;  %1152 = vmatprep.mubr.msk.bf16.mxu0 %vm1292_vm0, %v1291_v1 }
  0x2d   : > { %1172 = vmatprep.mubr.msk.bf16.mxu1 %vm1292_vm0, %v1291_v1  ;;  %1157 = vmatpush3.bf16.msra.mxu1 %v1243_v28 }
  0x2e   : > { %1158 = vmatprep.subr.bf16.mxu1 %v1291_v1 }
  0x2f   : > { %1139 = vmatpush3.bf16.msra.mxu0 %v1236_v20 }
  0x30   : > { %1140 = vmatprep.subr.bf16.mxu0 %v1291_v1 }
  0x31   : > { %1159 = vmatpush3.bf16.msra.mxu1 %v1244_v29 }
  0x32   : > { %1160 = vmatprep.subr.bf16.mxu1 %v1291_v1 }
  0x33   : > { %1141 = vmatpush3.bf16.msra.mxu0 %v1237_v21 }
  0x34   : > { %1142 = vmatprep.subr.bf16.mxu0 %v1291_v1 }
  0x35   : > { %1161 = vmatpush3.bf16.msra.mxu1 %v1245_v30 }
  0x36   : > { %1162 = vmatprep.subr.bf16.mxu1 %v1291_v1 }
  0x37   : > { %1143 = vmatpush3.bf16.msra.mxu0 %v1238_v22 }
  0x38   : > { %1144 = vmatprep.subr.bf16.mxu0 %v1291_v1 }
  0x39   : > { %1163 = vmatpush3.bf16.msra.mxu1 %v1246_v31 }
  0x3a   : > { %1164 = vmatprep.subr.bf16.mxu1 %v1291_v1 }
  0x3b   : > { %1145 = vmatpush3.bf16.msra.mxu0 %v1239_v23 }
  0x3c   : > { %1146 = vmatprep.subr.bf16.mxu0 %v1291_v1 }
  0x3d   : > { %1165 = vmatpush3.bf16.msra.mxu1 %v1247_v32 }
  0x3e   : > { %1166 = vmatprep.subr.bf16.mxu1 %v1291_v1 }
  0x3f   : > { %1147 = vmatpush3.bf16.msra.mxu0 %v1240_v24 }
  0x40   : > { %1148 = vmatprep.subr.bf16.mxu0 %v1291_v1 }
  0x41   : > { %1167 = vmatpush3.bf16.msra.mxu1 %v1248_v33 }
  0x42   : > { %1168 = vmatprep.subr.bf16.mxu1 %v1291_v1 }
  0x43   : > { %1149 = vmatpush3.bf16.msra.mxu0 %v1241_v25 }
  0x44   : > { %1150 = vmatprep.subr.bf16.mxu0 %v1291_v1 }
  0x45   : > { %1169 = vmatpush3.bf16.msra.mxu1 %v1249_v34 }
  0x46   : > { %1170 = vmatprep.subr.bf16.mxu1 %v1291_v1 }
  0x47   : > { %1151 = vmatpush3.bf16.msra.mxu0 %v1242_v26 }
  0x49   : > { %1171 = vmatpush3.bf16.msra.mxu1 %v1250_v35 }
  0x4a   : > { %1153 = vmatmul.mubr.bf16.vlgmr.msra.gmra.mrb[4].mxu0 %v619_v27 }
  0xfd   : > { %v525_v36 = vpop.f32.mrb[0].mxu0 }
  0xfe   : > { %v1114_v37 = vpop.f32.mrb[1].mxu0  ;;  %v613_v38 = vpop.f32.mrb[0].mxu1 }
  0xff   : > { %v614_v39 = vadd.f32 %v613_v38, %v525_v36  ;;  %v528_v40 = vpop.f32.mrb[2].mxu0  ;;  %v1134_v41 = vpop.f32.mrb[1].mxu1 }
 0x100   : > { %v1115_v42 = vpop.f32.mrb[3].mxu0  ;;  %v616_v43 = vpop.f32.mrb[2].mxu1 }
 0x101   : > { %v1135_v44 = vpop.f32.mrb[3].mxu1 }
 0x11d   : > { %v719_v45 = vpop.f32.mrb[4].mxu0 }
 0x11e   : > { %v725_v47 = vadd.f32 %v719_v45, %v614_v39  ;;  %v1154_v48 = vpop.f32.mrb[5].mxu0 }
 0x11f   : > { %v722_v49 = vpop.f32.mrb[6].mxu0 }
 0x120   : > { %v733_v50 = vadd.f32 %v1048_v46, %v725_v47  ;;  %v1155_v51 = vpop.f32.mrb[7].mxu0 }
 0x122   : > { %v734_v52 = vmax.f32 %v733_v50, 0.0 }
 0x124   : > { %v735_v53 = vmin.f32 %v734_v52, 6.0 }
 0x126   : > { %v736_v54 = vpack.c.bf16 %v735_v53, %v735_v53 }
 0x128   : > { %1173 = vmatmul.mubr.bf16.vlgmr.msra.gmra.mrb[4].mxu1 %v736_v54 }
 0x1fb   : > { %v842_v56 = vpop.f32.mrb[4].mxu1 }
 0x1fc   : > { %v843_v57 = vadd.f32 %v1049_v55, %v842_v56  ;;  %v1174_v58 = vpop.f32.mrb[5].mxu1 }
 0x1fd   : > { %v845_v59 = vpop.f32.mrb[6].mxu1 }
 0x1fe   : > { %v848_v60 = vmax.f32 %v843_v57, 0.0  ;;  %v1175_v61 = vpop.f32.mrb[7].mxu1 }
 0x200   : > { %v849_v62 = vmin.f32 %v848_v60, 6.0 }
 0x202   : > { %850 = vst [vmem:[%s406_s22] sm:$0xff] %v849_v62 }
 0x203 PF: > { %s17_s28 = sadd.s32 1, %s1289_s28   ;;  %s1564_s24 = smov %s1281_s26 }
 0x204   : > { %p14_p10 = scmp.ge.s32.totalorder %s17_s28, 18   ;;  %s1565_s25 = smov %s1285_s27 }
 0x205   : > { %s1566_s26 = smov %s1569_s29  ;;  %s1567_s27 = smov %s1573_s30 }
 0x206   :  { %16 = sbr.rel (!%p14_p10) target bundleno = 3 (0x3), region = 86 }

</bundles_post_ra>
